<compile_context>
chip_gen: v6e
topology: v6e:2x2x1
jax: 0.10.0
libtpu: 0.0.40
codegen_flags: <defaults>
</compile_context>

<pallas_src>
import functools

import jax
import jax.numpy as jnp
from jax.experimental import pallas as pl
from jax.experimental.pallas import tpu as pltpu


def _round_up(x, m):
    return ((x + m - 1) // m) * m


# --------------------------------------------------------------------------- #
# Kernels
# --------------------------------------------------------------------------- #
def _two_nn_fused_kernel(x_ref, w1_ref, b1_ref, w2_ref, b2_ref, w3_ref, b3_ref,
                         o_ref):
    """Fused 3-layer MLP on one (TB, F) batch tile; w1/w2 are VMEM-resident."""
    x = x_ref[...].astype(jnp.bfloat16)                       # cast on VPU, in-kernel
    h1 = jnp.dot(x, w1_ref[...], preferred_element_type=jnp.float32)
    h1 = jnp.maximum(h1 + b1_ref[...], 0.0)
    h2 = jnp.dot(h1.astype(jnp.bfloat16), w2_ref[...],
                 preferred_element_type=jnp.float32)
    h2 = jnp.maximum(h2 + b2_ref[...], 0.0)
    # Final 128 -> 1 layer on VPU (mul) + XLU (lane reduce); b3 rides in SMEM.
    out_col = jnp.sum(h2 * w3_ref[...], axis=-1, keepdims=True) + b3_ref[0, 0]
    o_ref[...] = out_col.T.astype(o_ref.dtype)                # (1, TB) lane-dense store


def _two_nn_ktiled_kernel(tk, f_valid,
                          x_ref, w1_ref, b1_ref, w2_ref, b2_ref, w3_ref, b3_ref,
                          o_ref, acc_ref):
    """Large-F path: fc1 is accumulated over a trailing 'arbitrary' K grid axis."""
    k = pl.program_id(1)

    @pl.when(k == 0)
    def _init():
        acc_ref[...] = jnp.zeros_like(acc_ref)

    x = x_ref[...]
    if f_valid % tk != 0:
        # Ragged last K block of x reads out-of-bounds columns; zero them so they
        # cannot contribute to the accumulator (w1 padding rows are true zeros).
        col = jax.lax.broadcasted_iota(jnp.int32, x.shape, 1) + k * tk
        x = jnp.where(col < f_valid, x, 0.0)
    acc_ref[...] += jnp.dot(x.astype(jnp.bfloat16), w1_ref[...],
                            preferred_element_type=jnp.float32)

    @pl.when(k == pl.num_programs(1) - 1)
    def _finish():
        h1 = jnp.maximum(acc_ref[...] + b1_ref[...], 0.0)
        h2 = jnp.dot(h1.astype(jnp.bfloat16), w2_ref[...],
                     preferred_element_type=jnp.float32)
        h2 = jnp.maximum(h2 + b2_ref[...], 0.0)
        out_col = jnp.sum(h2 * w3_ref[...], axis=-1, keepdims=True) + b3_ref[0, 0]
        o_ref[...] = out_col.T.astype(o_ref.dtype)            # (1, TB) lane-dense store


# --------------------------------------------------------------------------- #
# Tiling / VMEM sizing helpers
# --------------------------------------------------------------------------- #
def _vmem_budget():
    """(sizing budget, vmem_limit_bytes) from the per-core VMEM of this generation."""
    try:
        cap = int(pltpu.get_tpu_info().vmem_capacity_bytes)
    except Exception:
        cap = 64 * 1024 * 1024            # conservative: valid on every generation
    return int(cap * 0.70), int(cap * 0.82)


def _pick_tb(batch, tb_cap):
    """Rows per batch tile.

    - single full-batch tile when it fits (block == full dim is always legal),
    - but >= 2 tiles for large batches so v7x's two TensorCores both get work,
    - multiple of 128 whenever there is more than one tile (keeps the lane-dense
      (1, TB) output block legal).
    """
    if batch <= tb_cap:
        if batch >= 1024:
            return _round_up(pl.cdiv(batch, 2), 128)
        return batch
    return tb_cap


# --------------------------------------------------------------------------- #
# Forward wrapper
# --------------------------------------------------------------------------- #
@functools.partial(jax.jit, static_argnames=("force_k_tiling", "k_tile"))
def two_nn_reg_forward(x, w1, b1, w2, b2, w3, b3, *,
                       force_k_tiling=False, k_tile=None):
    if x.ndim == 4:
        x = x.reshape(x.shape[0], -1)     # contiguous .view(); no data movement
    B, F = x.shape
    H = w1.shape[1]                       # num_hiddens (128 by default)
    xbytes = x.dtype.itemsize

    budget, vmem_limit = _vmem_budget()

    # Small, grid-invariant operands (one-time cast/reshape; x itself is untouched).
    w1_bf = w1.astype(jnp.bfloat16)
    w2_bf = w2.astype(jnp.bfloat16)
    b1_f = b1.reshape(1, H).astype(jnp.float32)
    b2_f = b2.reshape(1, H).astype(jnp.float32)
    w3_row = w3.reshape(1, H).astype(jnp.float32)
    b3_s = b3.reshape(1, 1).astype(jnp.float32)

    cost = pl.CostEstimate(
        flops=2 * B * (F * H + H * H + H),
        transcendentals=0,
        bytes_accessed=B * F * xbytes + F * H * 2 + H * H * 2 + 4 * H * 4 + B * 4)

    # ---- fused-path sizing: w1 resident, x streamed in (TB, F) tiles ---------
    fixed_f = F * H * 2 + H * H * 2 + 4 * H * 4 + 4096
    per_row_f = 2 * F * xbytes + 4 * H * 4 + 8
    tb_cap_f = min(4096, max(0, ((budget - fixed_f) // per_row_f) // 128 * 128))
    use_ktiled = force_k_tiling or tb_cap_f < 256

    if not use_ktiled:
        TB = _pick_tb(B, tb_cap_f)
        num_tiles = pl.cdiv(B, TB)
        out_cols = num_tiles * TB
        res = pl.pallas_call(
            _two_nn_fused_kernel,
            out_shape=jax.ShapeDtypeStruct((1, out_cols), jnp.float32),
            grid=(num_tiles,),
            in_specs=[
                pl.BlockSpec((TB, F), lambda i: (i, 0)),                 # x (pipelined)
                pl.BlockSpec((F, H), lambda i: (0, 0),
                             pipeline_mode=pl.Buffered(1)),              # w1 resident
                pl.BlockSpec((1, H), lambda i: (0, 0),
                             pipeline_mode=pl.Buffered(1)),              # b1
                pl.BlockSpec((H, H), lambda i: (0, 0),
                             pipeline_mode=pl.Buffered(1)),              # w2 resident
                pl.BlockSpec((1, H), lambda i: (0, 0),
                             pipeline_mode=pl.Buffered(1)),              # b2
                pl.BlockSpec((1, H), lambda i: (0, 0),
                             pipeline_mode=pl.Buffered(1)),              # w3 row
                pl.BlockSpec(memory_space=pltpu.MemorySpace.SMEM),       # b3 scalar
            ],
            out_specs=pl.BlockSpec((1, TB), lambda i: (0, i)),           # lane-dense
            compiler_params=pltpu.CompilerParams(
                dimension_semantics=("parallel",),
                vmem_limit_bytes=vmem_limit),
            cost_estimate=cost,
        )(x, w1_bf, b1_f, w2_bf, b2_f, w3_row, b3_s)
    else:
        # ---- K-tiled path: stream w1 over F, accumulate fc1 in f32 scratch ----
        TK = _round_up(k_tile if k_tile is not None
                       else min(_round_up(F, 128), 2048), 128)
        K_pad = _round_up(F, TK)
        num_k = K_pad // TK
        if K_pad != F:
            # Pad w1 only (tiny, one-time); x is never padded or copied.
            w1_bf = jnp.pad(w1_bf, ((0, K_pad - F), (0, 0)))
        fixed_k = H * H * 2 + 4 * H * 4 + 2 * TK * H * 2 + 4096
        per_row_k = 2 * TK * xbytes + 6 * H * 4 + 8
        tb_cap_k = min(4096, max(128, ((budget - fixed_k) // per_row_k) // 128 * 128))
        TB = _pick_tb(B, tb_cap_k)
        num_tiles = pl.cdiv(B, TB)
        out_cols = num_tiles * TB
        kernel = functools.partial(_two_nn_ktiled_kernel, TK, F)
        res = pl.pallas_call(
            kernel,
            out_shape=jax.ShapeDtypeStruct((1, out_cols), jnp.float32),
            grid=(num_tiles, num_k),
            in_specs=[
                pl.BlockSpec((TB, TK), lambda i, k: (i, k)),             # x tile
                pl.BlockSpec((TK, H), lambda i, k: (k, 0)),              # w1 K-block
                pl.BlockSpec((1, H), lambda i, k: (0, 0),
                             pipeline_mode=pl.Buffered(1)),              # b1
                pl.BlockSpec((H, H), lambda i, k: (0, 0),
                             pipeline_mode=pl.Buffered(1)),              # w2 resident
                pl.BlockSpec((1, H), lambda i, k: (0, 0),
                             pipeline_mode=pl.Buffered(1)),              # b2
                pl.BlockSpec((1, H), lambda i, k: (0, 0),
                             pipeline_mode=pl.Buffered(1)),              # w3 row
                pl.BlockSpec(memory_space=pltpu.MemorySpace.SMEM),       # b3 scalar
            ],
            out_specs=pl.BlockSpec((1, TB), lambda i, k: (0, i)),
            scratch_shapes=[pltpu.VMEM((TB, H), jnp.float32)],           # fc1 accumulator
            compiler_params=pltpu.CompilerParams(
                dimension_semantics=("parallel", "arbitrary"),
                vmem_limit_bytes=vmem_limit),
            cost_estimate=cost,
        )(x, w1_bf, b1_f, w2_bf, b2_f, w3_row, b3_s)

    return res[0, :B].reshape(B, 1)


# --------------------------------------------------------------------------- #
# Parameter init + references
# --------------------------------------------------------------------------- #
def init_two_nn_reg_params(key, in_features, num_hiddens=128):
    """nn.Linear-style init (U(-k, k), k=1/sqrt(fan_in)); weights stored (in, out)."""
    k1, k2, k3, k4, k5, k6 = jax.random.split(key, 6)

    def uniform(k, shape, fan_in):
        bound = 1.0 / jnp.sqrt(jnp.float32(fan_in))
        return jax.random.uniform(k, shape, jnp.float32, -bound, bound)

    w1 = uniform(k1, (in_features, num_hiddens), in_features)
    b1 = uniform(k2, (1, num_hiddens), in_features)
    w2 = uniform(k3, (num_hiddens, num_hiddens), num_hiddens)
    b2 = uniform(k4, (1, num_hiddens), num_hiddens)
    w3 = uniform(k5, (num_hiddens, 1), num_hiddens)
    b3 = uniform(k6, (1, 1), num_hiddens)
    return w1, b1, w2, b2, w3, b3


def _reference_f32(x, w1, b1, w2, b2, w3, b3):
    """Pure-f32 JAX reference (module semantics)."""
    if x.ndim == 4:
        x = x.reshape(x.shape[0], -1)
    h1 = jnp.maximum(x @ w1 + b1.reshape(1, -1), 0.0)
    h2 = jnp.maximum(h1 @ w2 + b2.reshape(1, -1), 0.0)
    return h2 @ w3.reshape(-1, 1) + b3.reshape(1, 1)


def _reference_mixed(x, w1, b1, w2, b2, w3, b3):
    """Reference using the kernel's bf16-input / f32-accumulate precision policy."""
    if x.ndim == 4:
        x = x.reshape(x.shape[0], -1)
    h1 = jnp.dot(x.astype(jnp.bfloat16), w1.astype(jnp.bfloat16),
                 preferred_element_type=jnp.float32) + b1.reshape(1, -1)
    h1 = jnp.maximum(h1, 0.0)
    h2 = jnp.dot(h1.astype(jnp.bfloat16), w2.astype(jnp.bfloat16),
                 preferred_element_type=jnp.float32) + b2.reshape(1, -1)
    h2 = jnp.maximum(h2, 0.0)
    return h2 @ w3.reshape(-1, 1) + b3.reshape(1, 1)


if __name__ == "__main__":
    key = jax.random.PRNGKey(0)
    kx1, kp1, kx2, kp2 = jax.random.split(key, 4)

    # ---- Test 1: fused path (small shapes consistent with the module) --------
    B, C, Hs, Ws = 8, 2, 4, 4
    in_features = C * Hs * Ws                     # 32
    num_hiddens = 128
    x = jax.random.normal(kx1, (B, C, Hs, Ws), dtype=jnp.float32)
    params = init_two_nn_reg_params(kp1, in_features, num_hiddens)

    out = jax.block_until_ready(two_nn_reg_forward(x, *params))
    assert out.shape == (B, 1), out.shape
    ref_m = _reference_mixed(x, *params)
    assert jnp.allclose(out, ref_m, atol=2e-3, rtol=2e-3), (
        f"mixed-precision max abs err {jnp.max(jnp.abs(out - ref_m))}")
    ref_f = _reference_f32(x, *params)
    assert jnp.allclose(out, ref_f, atol=5e-2, rtol=5e-2), (
        f"f32-reference max abs err {jnp.max(jnp.abs(out - ref_f))}")

    # ---- Test 2: K-tiled path (exercises the large-in_features branch) -------
    B2, F2 = 64, 200                              # F2 % 128 != 0 -> masks the ragged K block
    x2 = jax.random.normal(kx2, (B2, F2), dtype=jnp.float32)
    params2 = init_two_nn_reg_params(kp2, F2, num_hiddens)
    out2 = jax.block_until_ready(
        two_nn_reg_forward(x2, *params2, force_k_tiling=True, k_tile=128))
    assert out2.shape == (B2, 1), out2.shape
    ref2 = _reference_mixed(x2, *params2)
    assert jnp.allclose(out2, ref2, atol=2e-3, rtol=2e-3), (
        f"k-tiled max abs err {jnp.max(jnp.abs(out2 - ref2))}")

    print("KERNEL_OK")
</pallas_src>

<mosaic_0001>
module attributes {stable_mosaic.version = 11 : i64} {
  func.func @_two_nn_fused_kernel(%arg0: i32, %arg1: memref<8x32xf32, #tpu.memory_space<vmem>>, %arg2: memref<32x128xbf16, #tpu.memory_space<vmem>>, %arg3: memref<1x128xf32, #tpu.memory_space<vmem>>, %arg4: memref<128x128xbf16, #tpu.memory_space<vmem>>, %arg5: memref<1x128xf32, #tpu.memory_space<vmem>>, %arg6: memref<1x128xf32, #tpu.memory_space<vmem>>, %arg7: memref<1x1xf32, #tpu.memory_space<smem>>, %arg8: memref<1x8xf32, #tpu.memory_space<vmem>>) attributes {dimension_semantics = [#tpu.dimension_semantics<parallel>], iteration_bounds = array<i64: 1>, scalar_prefetch = 0 : i64, scratch_operands = 0 : i64, tpu.core_type = #tpu.core_type<tc>, window_params = [{transform_indices = @transform_0, window_bounds = array<i64: 8, 32>}, {pipeline_mode = #tpu.pipeline_mode<synchronous>, transform_indices = @transform_1, window_bounds = array<i64: 32, 128>}, {pipeline_mode = #tpu.pipeline_mode<synchronous>, transform_indices = @transform_2, window_bounds = array<i64: 1, 128>}, {pipeline_mode = #tpu.pipeline_mode<synchronous>, transform_indices = @transform_3, window_bounds = array<i64: 128, 128>}, {pipeline_mode = #tpu.pipeline_mode<synchronous>, transform_indices = @transform_4, window_bounds = array<i64: 1, 128>}, {pipeline_mode = #tpu.pipeline_mode<synchronous>, transform_indices = @transform_5, window_bounds = array<i64: 1, 128>}, {transform_indices = @transform_6, window_bounds = array<i64: 1, 1>}, {transform_indices = @transform_7, window_bounds = array<i64: 1, 8>}]} {
    %c0 = arith.constant 0 : index
    %c0_0 = arith.constant 0 : index
    %0 = vector.load %arg1[%c0, %c0_0] : memref<8x32xf32, #tpu.memory_space<vmem>>, vector<8x32xf32>
    %1 = arith.truncf %0 : vector<8x32xf32> to vector<8x32xbf16>
    %c0_1 = arith.constant 0 : index
    %c0_2 = arith.constant 0 : index
    %2 = vector.load %arg2[%c0_1, %c0_2] : memref<32x128xbf16, #tpu.memory_space<vmem>>, vector<32x128xbf16>
    %cst = arith.constant dense<0.000000e+00> : vector<8x128xf32>
    %3 = tpu.matmul %1, %2, %cst {dimension_numbers = #tpu.dot_dimension_numbers<[1], [0], [0], [1], [0, 0, 1, 1], [], []>} : vector<8x32xbf16>, vector<32x128xbf16>, vector<8x128xf32> -> vector<8x128xf32>
    %c0_3 = arith.constant 0 : index
    %c0_4 = arith.constant 0 : index
    %4 = vector.load %arg3[%c0_3, %c0_4] : memref<1x128xf32, #tpu.memory_space<vmem>>, vector<1x128xf32>
    %5 = vector.broadcast %4 : vector<1x128xf32> to vector<8x128xf32>
    %6 = arith.addf %3, %5 : vector<8x128xf32>
    %cst_5 = arith.constant 0.000000e+00 : f32
    %7 = vector.broadcast %cst_5 : f32 to vector<8x128xf32>
    %8 = arith.maximumf %6, %7 : vector<8x128xf32>
    %9 = arith.truncf %8 : vector<8x128xf32> to vector<8x128xbf16>
    %c0_6 = arith.constant 0 : index
    %c0_7 = arith.constant 0 : index
    %10 = vector.load %arg4[%c0_6, %c0_7] : memref<128x128xbf16, #tpu.memory_space<vmem>>, vector<128x128xbf16>
    %cst_8 = arith.constant dense<0.000000e+00> : vector<8x128xf32>
    %11 = tpu.matmul %9, %10, %cst_8 {dimension_numbers = #tpu.dot_dimension_numbers<[1], [0], [0], [1], [0, 0, 1, 1], [], []>} : vector<8x128xbf16>, vector<128x128xbf16>, vector<8x128xf32> -> vector<8x128xf32>
    %c0_9 = arith.constant 0 : index
    %c0_10 = arith.constant 0 : index
    %12 = vector.load %arg5[%c0_9, %c0_10] : memref<1x128xf32, #tpu.memory_space<vmem>>, vector<1x128xf32>
    %13 = vector.broadcast %12 : vector<1x128xf32> to vector<8x128xf32>
    %14 = arith.addf %11, %13 : vector<8x128xf32>
    %cst_11 = arith.constant 0.000000e+00 : f32
    %15 = vector.broadcast %cst_11 : f32 to vector<8x128xf32>
    %16 = arith.maximumf %14, %15 : vector<8x128xf32>
    %c0_12 = arith.constant 0 : index
    %c0_13 = arith.constant 0 : index
    %17 = vector.load %arg6[%c0_12, %c0_13] : memref<1x128xf32, #tpu.memory_space<vmem>>, vector<1x128xf32>
    %18 = vector.broadcast %17 : vector<1x128xf32> to vector<8x128xf32>
    %19 = arith.mulf %16, %18 : vector<8x128xf32>
    %cst_14 = arith.constant dense<0.000000e+00> : vector<8xf32>
    %20 = vector.multi_reduction <add>, %19, %cst_14 [1] : vector<8x128xf32> to vector<8xf32>
    %21 = vector.shape_cast %20 : vector<8xf32> to vector<8x1xf32>
    %c0_15 = arith.constant 0 : index
    %c0_16 = arith.constant 0 : index
    %22 = memref.load %arg7[%c0_15, %c0_16] : memref<1x1xf32, #tpu.memory_space<smem>>
    %23 = vector.broadcast %22 : f32 to vector<8x1xf32>
    %24 = arith.addf %21, %23 : vector<8x1xf32>
    %25 = tpu.transpose %24, [1, 0] : vector<8x1xf32> -> vector<1x8xf32>
    %c0_17 = arith.constant 0 : index
    %c0_18 = arith.constant 0 : index
    %26 = vector.load %arg8[%c0_17, %c0_18] : memref<1x8xf32, #tpu.memory_space<vmem>>, vector<1x8xf32>
    tpu.vector_store %arg8[%c0_17, %c0_18], %25 {strides = array<i32>} : memref<1x8xf32, #tpu.memory_space<vmem>>, vector<1x8xf32>,
    return
  }
  func.func @transform_0(%arg0: i32) -> (i32, i32) {
    %c0_i32 = arith.constant 0 : i32
    %c0_i32_0 = arith.constant 0 : i32
    return %arg0, %c0_i32 : i32, i32
  }
  func.func @transform_1(%arg0: i32) -> (i32, i32) {
    %c0_i32 = arith.constant 0 : i32
    %c0_i32_0 = arith.constant 0 : i32
    %c0_i32_1 = arith.constant 0 : i32
    return %c0_i32, %c0_i32_0 : i32, i32
  }
  func.func @transform_2(%arg0: i32) -> (i32, i32) {
    %c0_i32 = arith.constant 0 : i32
    %c0_i32_0 = arith.constant 0 : i32
    %c0_i32_1 = arith.constant 0 : i32
    return %c0_i32, %c0_i32_0 : i32, i32
  }
  func.func @transform_3(%arg0: i32) -> (i32, i32) {
    %c0_i32 = arith.constant 0 : i32
    %c0_i32_0 = arith.constant 0 : i32
    %c0_i32_1 = arith.constant 0 : i32
    return %c0_i32, %c0_i32_0 : i32, i32
  }
  func.func @transform_4(%arg0: i32) -> (i32, i32) {
    %c0_i32 = arith.constant 0 : i32
    %c0_i32_0 = arith.constant 0 : i32
    %c0_i32_1 = arith.constant 0 : i32
    return %c0_i32, %c0_i32_0 : i32, i32
  }
  func.func @transform_5(%arg0: i32) -> (i32, i32) {
    %c0_i32 = arith.constant 0 : i32
    %c0_i32_0 = arith.constant 0 : i32
    %c0_i32_1 = arith.constant 0 : i32
    return %c0_i32, %c0_i32_0 : i32, i32
  }
  func.func @transform_6(%arg0: i32) -> (i32, i32) {
    %c0_i32 = arith.constant 0 : i32
    %c0_i32_0 = arith.constant 0 : i32
    %c0_i32_1 = arith.constant 0 : i32
    return %c0_i32, %c0_i32_0 : i32, i32
  }
  func.func @transform_7(%arg0: i32) -> (i32, i32) {
    %c0_i32 = arith.constant 0 : i32
    %c0_i32_0 = arith.constant 0 : i32
    return %c0_i32, %arg0 : i32, i32
  }
}

</mosaic_0001>

<bundles_post_ra>
// kernel: two_nn_reg_forward.1
= control target key start
LH: loop header
LB: loop body
LE: loop exit
PB: predicated region body
PF: predicated region fallthrough
CT: control target
= control target key end

     0   :  { %v362_v1 = vmov 0.0   ;;  %vm363_vm0 = vmmov 0   ;;  %vm54_vm1 = vcmask 261120   ;;  %s453_s0 = inlined_call_operand.vmem [shape: f32[8,32], index: 0, kind: input, shape index: {}]   ;;  %s454_s1 = inlined_call_operand.vmem [shape: bf16[32,128], index: 1, kind: input, shape index: {}]   ;;  %s455_s2 = inlined_call_operand.vmem [shape: f32[1,128], index: 2, kind: input, shape index: {}]   ;;  %s456_s3 = inlined_call_operand.vmem [shape: bf16[128,128], index: 3, kind: input, shape index: {}]   ;;  %s457_s4 = inlined_call_operand.vmem [shape: f32[1,128], index: 4, kind: input, shape index: {}]   ;;  %s458_s5 = inlined_call_operand.vmem [shape: f32[1,128], index: 5, kind: input, shape index: {}]   ;;  %s459_s6 = inlined_call_operand.<no memory space> [shape: f32[1,1], index: 6, kind: input, shape index: {}]   ;;  %s460_s7 = inlined_call_operand.hbm [shape: f32[1,8], index: 7, kind: output, shape index: {}]  }
   0x1   :  { %v330_v0 = vld [vmem:[%s454_s1 + $0x8] sm:$0xff]   ;;  %299 = vmatprep.subr.bf16.mxu0 %v362_v1  ;;  %v331_v2 = vld [vmem:[%s454_s1] sm:$0xff]   ;;  %307 = vmatprep.subr.bf16.mxu1 %v362_v1  ;;  %v332_v4 = vld [vmem:[%s456_s3 + $0x38] sm:$0xff]  }
   0x2   :  { %300 = vmatpush3.bf16.msra.mxu0 %v330_v0  ;;  %303 = vmatprep.mubr.msk.bf16.mxu0 %vm363_vm0, %v362_v1  ;;  %v29_v3 = vld [vmem:[%s453_s0] sm:$0xff]  ;;  %v333_v6 = vld [vmem:[%s456_s3 + $0x30] sm:$0xff]   ;;  %v334_v7 = vld [vmem:[%s456_s3 + $0x28] sm:$0xff]  }
   0x3   :  { %301 = vmatprep.subr.bf16.mxu0 %v362_v1  ;;  %323 = vmatprep.mubr.msk.bf16.mxu1 %vm363_vm0, %v362_v1  ;;  %v30_v5 = vpack.c.bf16 %v29_v3, %v29_v3 }
   0x4   :  { %308 = vmatpush3.bf16.msra.mxu1 %v332_v4 }
   0x5   :  { %309 = vmatprep.subr.bf16.mxu1 %v362_v1 }
   0x6   :  { %302 = vmatpush3.bf16.msra.mxu0 %v331_v2 }
   0x8   :  { %310 = vmatpush3.bf16.msra.mxu1 %v333_v6 }
   0x9   :  { %304 = vmatmul.mubr.msk.bf16.vlgmr.msra.gmra.mxu0 %vm54_vm1, %v30_v5  ;;  %311 = vmatprep.subr.bf16.mxu1 %v362_v1 }
   0xa   :  { %13 = vsyncpa [#allocation4], 0  ;;  %v335_v8 = vld [vmem:[%s456_s3 + $0x20] sm:$0xff]   ;;  %v336_v9 = vld [vmem:[%s456_s3 + $0x18] sm:$0xff]   ;;  %v223_v30 = vstv %s459_s6  ;;  %vm257_vm2 = vcmask 57344  }
   0xb   :  { %v337_v10 = vld [vmem:[%s456_s3 + $0x10] sm:$0xff]   ;;  %v338_v11 = vld [vmem:[%s456_s3 + $0x8] sm:$0xff]   ;;  %v339_v12 = vld [vmem:[%s456_s3] sm:$0xff]  }
   0xc   :  { %312 = vmatpush3.bf16.msra.mxu1 %v334_v7  ;;  %v273_v13 = vld [vmem:[%s455_s2] ss:$0 sm:$0xff] }
   0xd   :  { %313 = vmatprep.subr.bf16.mxu1 %v362_v1  ;;  %v277_v21 = vld [vmem:[%s457_s4] ss:$0 sm:$0xff]  ;;  %s364_s4 = smov [#allocation3]  }
   0xe   :  { %v286_v25 = vld [vmem:[%s458_s5] ss:$0 sm:$0xff]  ;;  %s265_s27 = sshll.u32 %s364_s4, 4  ;;  %s266_s27 = int_to_ptr.vmem [resolvable:$true] %s265_s27 }
   0xf   :  { %s340_s28 = scalar_lea.vmem %s266_s27, 16  ;;  %s344_s5 = scalar_lea.vmem %s266_s27, 32 }
  0x10   :  { %314 = vmatpush3.bf16.msra.mxu1 %v335_v8  ;;  %p341_p0 = scmp.ne.s32.totalorder %s266_s27, %s340_s28  ;;  %p345_p1 = scmp.lt.s32.totalorder %s266_s27, %s266_s27 }
  0x11   :  { %315 = vmatprep.subr.bf16.mxu1 %v362_v1  ;;  %p346_p2 = scmp.lt.s32.totalorder %s344_s5, %s340_s28 }
  0x13   :  { %p347_p3 = por %p346_p2, %p345_p1 }
  0x14   :  { %316 = vmatpush3.bf16.msra.mxu1 %v336_v9 }
  0x15   :  { %317 = vmatprep.subr.bf16.mxu1 %v362_v1  ;;  %p348_p4 = pnand %p347_p3, %p341_p0 }
  0x18   :  { %318 = vmatpush3.bf16.msra.mxu1 %v337_v10 }
  0x19   :  { %319 = vmatprep.subr.bf16.mxu1 %v362_v1 }
  0x1c   :  { %320 = vmatpush3.bf16.msra.mxu1 %v338_v11 }
  0x1d   :  { %321 = vmatprep.subr.bf16.mxu1 %v362_v1 }
  0x20   :  { %322 = vmatpush3.bf16.msra.mxu1 %v339_v12 }
  0xc9   :  { %v92_v14 = vpop.f32.mrf.mxu0 }
  0xca   :  { %v93_v15 = vadd.f32 %v273_v13, %v92_v14 }
  0xcb   :  { %v305_v16 = vpop.f32.mrf.mxu0 }
  0xcc   :  { %v98_v17 = vmax.f32 %v93_v15, 0.0 }
  0xcd   :  { %v95_v18 = vpop.f32.mrf.mxu0 }
  0xce   :  { %v99_v19 = vpack.c.bf16 %v98_v17, %v98_v17 }
  0xcf   :  { %v306_v20 = vpop.f32.mrf.mxu0 }
  0xd0   :  { %324 = vmatmul.mubr.bf16.vlgmr.msra.gmra.mxu1 %v99_v19 }
 0x190   :  { %v205_v22 = vpop.f32.mrf.mxu1 }
 0x191   :  { %v206_v23 = vadd.f32 %v277_v21, %v205_v22 }
 0x192   :  { %v325_v24 = vpop.f32.mrf.mxu1 }
 0x193   :  { %v211_v26 = vmax.f32 %v206_v23, 0.0 }
 0x194   :  { %v208_v27 = vpop.f32.mrf.mxu1 }
 0x195   :  { %v219_v28 = vmul.f32 %v286_v25, %v211_v26 }
 0x196   :  { %v326_v29 = vpop.f32.mrf.mxu1 }
 0x197   :  { %220 = vadd.xlane.f32.xlu0 %v219_v28 }
 0x220   :  { %v221_v31 = vpop.xlane.xlu0 %220 }
 0x221   :  { %v224_v32 = vadd.f32 %v223_v30, %v221_v31 }
 0x223   :  { %225 = vxpose.xlu0.b32.start.end [1/1] (short) (narrow) %v224_v32, 8 }
 0x29f   :  { %v241_v33 = vpop.trf.xlu0 }
 0x2a0   :  { %258 = vst.msk [vmem:[#allocation3] sm:$0x1] %vm257_vm2, %v241_v33 }
 0x2a1   :  { %351 = shalt.err (!%p348_p4)
}
 0x2a2   :  { %268 = dma.vmem_to_hbm [thread:$0]  %s266_s27, 16, %s460_s7, [#allocation4]  }
 0x2a3   :  { %360 = dma.done.wait [#allocation4], 16  }
 0x2a4   :  { %361 = vsyncadd [#allocation4], 4294967280 }
 0x2a5   :  { %272 = vsyncpa [#allocation4], 1 }

</bundles_post_ra>
